<compile_context>
chip_gen: v6e
topology: v6e:2x2x1
jax: 0.10.0
libtpu: 0.0.40
codegen_flags: <defaults>
</compile_context>

<pallas_src>
import math
import functools

import jax
import jax.numpy as jnp
from jax.experimental import pallas as pl
from jax.experimental.pallas import tpu as pltpu


# Scoped-VMEM budget: conservative for v7x (64 MiB physical); plenty for the
# tiny tiles used here, generous headroom on v5e/v6e (128 MiB physical).
_VMEM_LIMIT_BYTES = 32 * 1024 * 1024

# One-time probe result for the "direct" (in-kernel tap loop) deconv path.
_DECONV_DIRECT_STATUS = None  # None = untried, True = works, False = use fallback


def _round_up(x, m):
    return (x + m - 1) // m * m


def _tile_rows(M, tm=256):
    """Row-tile size (multiple of 16, <=tm) and padded row count."""
    TM = min(tm, _round_up(M, 16))
    Mp = _round_up(M, TM)
    return TM, Mp


# --------------------------------------------------------------------------
# Fused MLP stack + GMM log p(z) kernel  (row-tiled, parallel grid)
# --------------------------------------------------------------------------

def _mlp_gmm_kernel(*refs, n_layers, activations):
    # refs = z, (w, b) * n_layers, zsq_coef, mu_coef, const, h_out, logpz_out
    z_ref = refs[0]
    a_ref = refs[1 + 2 * n_layers]
    bc_ref = refs[2 + 2 * n_layers]
    c_ref = refs[3 + 2 * n_layers]
    h_out_ref = refs[4 + 2 * n_layers]
    lp_out_ref = refs[5 + 2 * n_layers]

    z = z_ref[...].astype(jnp.float32)

    # ---- MLP chain: bf16 MXU matmuls, f32 accumulation, fused ReLU ----
    h = z
    for li in range(n_layers):
        w_ref = refs[1 + 2 * li]
        b_ref = refs[2 + 2 * li]
        acc = jnp.dot(h.astype(jnp.bfloat16), w_ref[...],
                      preferred_element_type=jnp.float32) + b_ref[...]
        if activations[li] == "relu":
            acc = jnp.maximum(acc, 0.0)
        elif activations[li] == "sigmoid":
            acc = jax.nn.sigmoid(acc)
        h = acc
    h_out_ref[...] = h.astype(h_out_ref.dtype)

    # ---- GMM log p(z) epilogue (tiny; coefficients precomputed at init) ----
    #   log N(z | mu_k, sigma_k) summed over D =
    #     -0.5*(z*z)@inv_var_k + z@(mu_k*inv_var_k) + const_k
    lp = -0.5 * jnp.dot(z * z, a_ref[...], preferred_element_type=jnp.float32)
    lp = lp + jnp.dot(z, bc_ref[...], preferred_element_type=jnp.float32)
    lp = lp + c_ref[...]
    m = jnp.max(lp, axis=-1, keepdims=True)
    lse = m + jnp.log(jnp.sum(jnp.exp(lp - m), axis=-1, keepdims=True))
    lp_out_ref[...] = lse - math.log(lp.shape[-1])


def mlp_gmm_pallas(z2d, params, tm=256):
    """Runs the whole MLP (ReLU after every Linear) and the GMM log p(z)."""
    M, D = z2d.shape
    layers = params["mlp"]
    n_layers = len(layers)
    acts = tuple(["relu"] * n_layers)
    A = params["gmm_zsq_coef"]          # (D, K)
    Bc = params["gmm_mu_coef"]          # (D, K)
    Cc = params["gmm_const"]            # (1, K)
    K = A.shape[1]
    N_out = layers[-1][0].shape[1]

    TM, Mp = _tile_rows(M, tm)
    zp = z2d.astype(jnp.float32)
    if Mp != M:
        zp = jnp.pad(zp, ((0, Mp - M), (0, 0)))

    in_specs = [pl.BlockSpec((TM, D), lambda i: (i, 0))]
    args = [zp]
    for (w, b) in layers:
        kk, nn = w.shape
        in_specs.append(pl.BlockSpec((kk, nn), lambda i: (0, 0)))
        in_specs.append(pl.BlockSpec((1, nn), lambda i: (0, 0)))
        args.append(w.astype(jnp.bfloat16))
        args.append(b.reshape(1, nn).astype(jnp.float32))
    in_specs += [pl.BlockSpec((D, K), lambda i: (0, 0)),
                 pl.BlockSpec((D, K), lambda i: (0, 0)),
                 pl.BlockSpec((1, K), lambda i: (0, 0))]
    args += [A.astype(jnp.float32), Bc.astype(jnp.float32), Cc.astype(jnp.float32)]

    h, logpz = pl.pallas_call(
        functools.partial(_mlp_gmm_kernel, n_layers=n_layers, activations=acts),
        out_shape=(jax.ShapeDtypeStruct((Mp, N_out), jnp.float32),
                   jax.ShapeDtypeStruct((Mp, 1), jnp.float32)),
        grid=(Mp // TM,),
        in_specs=in_specs,
        out_specs=(pl.BlockSpec((TM, N_out), lambda i: (i, 0)),
                   pl.BlockSpec((TM, 1), lambda i: (i, 0))),
        compiler_params=pltpu.CompilerParams(
            dimension_semantics=("parallel",),
            vmem_limit_bytes=_VMEM_LIMIT_BYTES),
    )(*args)
    if Mp != M:
        h, logpz = h[:M], logpz[:M]
    return h, logpz[:, 0]


# --------------------------------------------------------------------------
# Generic row-tiled fused Linear chain (used by the im2col fallback path)
# --------------------------------------------------------------------------

def _linear_chain_kernel(*refs, n_layers, activations):
    x_ref = refs[0]
    o_ref = refs[-1]
    h = x_ref[...]
    for li in range(n_layers):
        w_ref = refs[1 + 2 * li]
        b_ref = refs[2 + 2 * li]
        acc = jnp.dot(h.astype(jnp.bfloat16), w_ref[...],
                      preferred_element_type=jnp.float32) + b_ref[...]
        if activations[li] == "relu":
            acc = jnp.maximum(acc, 0.0)
        elif activations[li] == "sigmoid":
            acc = jax.nn.sigmoid(acc)
        h = acc
    o_ref[...] = h.astype(o_ref.dtype)


def linear_chain_pallas(x, layers, activations, out_dtype=jnp.float32, tm=256):
    """y = chain of act_i(h @ w_i + b_i), tiled over rows ("parallel" grid)."""
    M, K0 = x.shape
    N_out = layers[-1][0].shape[1]
    TM, Mp = _tile_rows(M, tm)
    xp = x if Mp == M else jnp.pad(x, ((0, Mp - M), (0, 0)))

    in_specs = [pl.BlockSpec((TM, K0), lambda i: (i, 0))]
    args = [xp]
    for (w, b) in layers:
        kk, nn = w.shape
        in_specs.append(pl.BlockSpec((kk, nn), lambda i: (0, 0)))
        in_specs.append(pl.BlockSpec((1, nn), lambda i: (0, 0)))
        args.append(w.astype(jnp.bfloat16))
        args.append(b.reshape(1, nn).astype(jnp.float32))

    out = pl.pallas_call(
        functools.partial(_linear_chain_kernel, n_layers=len(layers),
                          activations=tuple(activations)),
        out_shape=jax.ShapeDtypeStruct((Mp, N_out), out_dtype),
        grid=(Mp // TM,),
        in_specs=in_specs,
        out_specs=pl.BlockSpec((TM, N_out), lambda i: (i, 0)),
        compiler_params=pltpu.CompilerParams(
            dimension_semantics=("parallel",),
            vmem_limit_bytes=_VMEM_LIMIT_BYTES),
    )(*args)
    return out[:M] if Mp != M else out


# --------------------------------------------------------------------------
# ConvTranspose2d  (NHWC, PyTorch semantics: output_padding=0, dilation=1)
# --------------------------------------------------------------------------

def _deconv_prep(x_nhwc, w, stride, padding):
    """Fractionally-strided (dilated) + padded input and re-arranged weight."""
    N, Hi, Wi, Ci = x_nhwc.shape
    Ci2, Co, kh, kw = w.shape
    assert Ci == Ci2 and kh == kw
    k = kh
    pad = k - 1 - padding
    assert pad >= 0, "dec padding > kernel-1 not supported"
    Hd, Wd = (Hi - 1) * stride + 1, (Wi - 1) * stride + 1
    Ho, Wo = Hd + 2 * pad - k + 1, Wd + 2 * pad - k + 1
    xd = jnp.zeros((N, Hd, Wd, Ci), x_nhwc.dtype).at[:, ::stride, ::stride, :].set(x_nhwc)
    xp = jnp.pad(xd, ((0, 0), (pad, pad), (pad, pad), (0, 0))).astype(jnp.bfloat16)
    # equivalent plain-conv weight, tap-major: (k, k, Ci, Co)
    w_dir = jnp.flip(w, (2, 3)).transpose(2, 3, 0, 1).astype(jnp.bfloat16)
    return xp, w_dir, k, Ho, Wo


# ----- direct path: tap accumulation inside the kernel (no HBM im2col) -----

def _deconv_direct_kernel(xp_ref, w_ref, b_ref, o_ref, *, k, Ho, Wo, activation):
    Ci = w_ref.shape[2]
    Co = w_ref.shape[3]
    acc = jnp.zeros((Ho, Wo, Co), jnp.float32)
    for ih in range(k):
        for iw in range(k):
            x_slab = xp_ref[ih:ih + Ho, iw:iw + Wo, :]               # (Ho, Wo, Ci)
            w_tap = jnp.broadcast_to(w_ref[ih, iw], (Ho, Ci, Co))    # (Ho, Ci, Co)
            acc = acc + jnp.einsum("hwc,hcd->hwd", x_slab, w_tap,
                                   preferred_element_type=jnp.float32)
    acc = acc + b_ref[...]
    if activation == "relu":
        acc = jnp.maximum(acc, 0.0)
    elif activation == "sigmoid":
        acc = jax.nn.sigmoid(acc)
    o_ref[...] = acc.astype(o_ref.dtype)


def _deconv_direct_pallas(x_nhwc, w, b, stride, padding, activation, out_dtype):
    xp, w_dir, k, Ho, Wo = _deconv_prep(x_nhwc, w, stride, padding)
    N, Hp, Wp, Ci = xp.shape
    Co = w_dir.shape[-1]
    b3 = b.reshape(1, 1, Co).astype(jnp.float32)
    return pl.pallas_call(
        functools.partial(_deconv_direct_kernel, k=k, Ho=Ho, Wo=Wo,
                          activation=activation),
        out_shape=jax.ShapeDtypeStruct((N, Ho, Wo, Co), out_dtype),
        grid=(N,),
        in_specs=[
            pl.BlockSpec((None, Hp, Wp, Ci), lambda n: (n, 0, 0, 0)),
            pl.BlockSpec((k, k, Ci, Co), lambda n: (0, 0, 0, 0)),
            pl.BlockSpec((1, 1, Co), lambda n: (0, 0, 0)),
        ],
        out_specs=pl.BlockSpec((None, Ho, Wo, Co), lambda n: (n, 0, 0, 0)),
        compiler_params=pltpu.CompilerParams(
            dimension_semantics=("parallel",),
            vmem_limit_bytes=_VMEM_LIMIT_BYTES),
    )(xp, w_dir, b3)


def _deconv_last_kernel(xp_ref, w_ref, b_ref, xt_ref, o_ref, ll_ref, *, k, Ho, Wo):
    """Last deconv layer fused with Sigmoid + Bernoulli LL (reduced over C)."""
    Ci = w_ref.shape[2]
    Co = w_ref.shape[3]
    acc = jnp.zeros((Ho, Wo, Co), jnp.float32)
    for ih in range(k):
        for iw in range(k):
            x_slab = xp_ref[ih:ih + Ho, iw:iw + Wo, :]
            w_tap = jnp.broadcast_to(w_ref[ih, iw], (Ho, Ci, Co))
            acc = acc + jnp.einsum("hwc,hcd->hwd", x_slab, w_tap,
                                   preferred_element_type=jnp.float32)
    recon = jax.nn.sigmoid(acc + b_ref[...])
    o_ref[...] = recon.astype(o_ref.dtype)
    EPS = 1e-9                                     # matches module's binary_cross_entropy
    xt = xt_ref[...].astype(jnp.float32)
    v = jnp.log(recon + EPS) * xt + jnp.log(1.0 - recon + EPS) * (1.0 - xt)
    ll_ref[...] = jnp.sum(v, axis=-1)              # (Ho, Wo); spatial sum done in glue


def _deconv_last_fused_pallas(x_nhwc, w, b, stride, padding, xt_nhwc):
    xp, w_dir, k, Ho, Wo = _deconv_prep(x_nhwc, w, stride, padding)
    N, Hp, Wp, Ci = xp.shape
    Co = w_dir.shape[-1]
    Ct = xt_nhwc.shape[-1]
    assert (Ho, Wo) == (xt_nhwc.shape[1], xt_nhwc.shape[2]) and Ct == Co
    b3 = b.reshape(1, 1, Co).astype(jnp.float32)
    recon, ll_map = pl.pallas_call(
        functools.partial(_deconv_last_kernel, k=k, Ho=Ho, Wo=Wo),
        out_shape=(jax.ShapeDtypeStruct((N, Ho, Wo, Co), jnp.float32),
                   jax.ShapeDtypeStruct((N, Ho, Wo), jnp.float32)),
        grid=(N,),
        in_specs=[
            pl.BlockSpec((None, Hp, Wp, Ci), lambda n: (n, 0, 0, 0)),
            pl.BlockSpec((k, k, Ci, Co), lambda n: (0, 0, 0, 0)),
            pl.BlockSpec((1, 1, Co), lambda n: (0, 0, 0)),
            pl.BlockSpec((None, Ho, Wo, Ct), lambda n: (n, 0, 0, 0)),
        ],
        out_specs=(pl.BlockSpec((None, Ho, Wo, Co), lambda n: (n, 0, 0, 0)),
                   pl.BlockSpec((None, Ho, Wo), lambda n: (n, 0, 0))),
        compiler_params=pltpu.CompilerParams(
            dimension_semantics=("parallel",),
            vmem_limit_bytes=_VMEM_LIMIT_BYTES),
    )(xp, w_dir, b3, xt_nhwc.astype(jnp.float32))
    ll = jnp.sum(ll_map.reshape(N, -1), axis=-1)
    return recon, ll


# ----- fallback path: glue im2col (NHWC) + tiled matmul kernel -----

def _bernoulli_ll_kernel(recon_ref, x_ref, o_ref):
    EPS = 1e-9
    r = recon_ref[...].astype(jnp.float32)
    x = x_ref[...]
    v = jnp.log(r + EPS) * x + jnp.log(1.0 - r + EPS) * (1.0 - x)
    o_ref[...] = jnp.sum(v, axis=-1, keepdims=True)


def bernoulli_ll_pallas(recon_flat, x_flat, tm=256):
    M, P = recon_flat.shape
    TM, Mp = _tile_rows(M, tm)
    rf = recon_flat.astype(jnp.float32)
    xf = x_flat.astype(jnp.float32)
    if Mp != M:
        rf = jnp.pad(rf, ((0, Mp - M), (0, 0)))
        xf = jnp.pad(xf, ((0, Mp - M), (0, 0)))
    out = pl.pallas_call(
        _bernoulli_ll_kernel,
        out_shape=jax.ShapeDtypeStruct((Mp, 1), jnp.float32),
        grid=(Mp // TM,),
        in_specs=[pl.BlockSpec((TM, P), lambda i: (i, 0)),
                  pl.BlockSpec((TM, P), lambda i: (i, 0))],
        out_specs=pl.BlockSpec((TM, 1), lambda i: (i, 0)),
        compiler_params=pltpu.CompilerParams(
            dimension_semantics=("parallel",),
            vmem_limit_bytes=_VMEM_LIMIT_BYTES),
    )(rf, xf)
    return out[:M, 0]


def _deconv_im2col_pallas(x_nhwc, w, b, stride, padding, activation, out_dtype):
    # TODO(synk): this fallback still materializes the k^2-amplified im2col slab
    # in HBM; the preferred path above avoids it entirely.
    xp, w_dir, k, Ho, Wo = _deconv_prep(x_nhwc, w, stride, padding)
    N, Hp, Wp, Ci = xp.shape
    Co = w_dir.shape[-1]
    cols = [xp[:, ih:ih + Ho, iw:iw + Wo, :] for ih in range(k) for iw in range(k)]
    patches = jnp.stack(cols, axis=3).reshape(N * Ho * Wo, k * k * Ci)
    w_mat = w_dir.reshape(k * k * Ci, Co)
    out = linear_chain_pallas(patches, [(w_mat, b)], [activation], out_dtype=out_dtype)
    return out.reshape(N, Ho, Wo, Co)


# ----- deconv stack driver (direct path with one-time fallback probe) -----

def _deconv_stack_direct(params, h_nhwc, xt_nhwc):
    layers = params["deconv"]
    h = h_nhwc
    for (w, b, s_, p_) in layers[:-1]:
        h = _deconv_direct_pallas(h, w, b, s_, p_, activation="relu",
                                  out_dtype=jnp.bfloat16)
    w, b, s_, p_ = layers[-1]
    return _deconv_last_fused_pallas(h, w, b, s_, p_, xt_nhwc)


def _deconv_stack_im2col(params, h_nhwc, xt_nhwc):
    layers = params["deconv"]
    n = len(layers)
    h = h_nhwc
    for i, (w, b, s_, p_) in enumerate(layers):
        act = "sigmoid" if i == n - 1 else "relu"
        od = jnp.float32 if i == n - 1 else jnp.bfloat16
        h = _deconv_im2col_pallas(h, w, b, s_, p_, act, od)
    N = h.shape[0]
    ll = bernoulli_ll_pallas(h.reshape(N, -1), xt_nhwc.reshape(N, -1))
    return h, ll


def deconv_stack(params, h_nhwc, xt_nhwc):
    global _DECONV_DIRECT_STATUS
    if _DECONV_DIRECT_STATUS is not False:
        try:
            out = _deconv_stack_direct(params, h_nhwc, xt_nhwc)
            jax.block_until_ready(out)
            _DECONV_DIRECT_STATUS = True
            return out
        except Exception:
            _DECONV_DIRECT_STATUS = False
    return _deconv_stack_im2col(params, h_nhwc, xt_nhwc)


# --------------------------------------------------------------------------
# Parameter construction (deterministic, synthetic)
# --------------------------------------------------------------------------

def cnn_output_shape(h, w, kernels, strides, paddings):
    for k, s, p in zip(kernels, strides, paddings):
        h = (h + 2 * p - k) // s + 1
        w = (w + 2 * p - k) // s + 1
    return h, w


def init_decoder_gmm_params(key, *, im_height, im_width, input_channels, channels,
                            kernels, strides, paddings, hidden_dims, latent_dim,
                            dec_paddings, num_clusters):
    channels = list(channels)
    kernels = list(kernels)
    strides = list(strides)
    hidden_dims = list(hidden_dims)

    deconv_h, deconv_w = cnn_output_shape(im_height, im_width, kernels, strides, paddings)
    channels.reverse()
    kernels.reverse()
    strides.reverse()
    deconv_input_channels = channels[0]
    out_channels = channels[1:] + [input_channels]
    mlp_output_dim = deconv_input_channels * deconv_h * deconv_w
    hidden_dims.reverse()
    hidden_dims.append(mlp_output_dim)

    params = {"deconv_input_shape": (deconv_input_channels, deconv_h, deconv_w)}

    # MLP: latent_dim -> hidden_dims (each Linear followed by ReLU)
    mlp = []
    dims = [latent_dim] + hidden_dims
    for i in range(len(dims) - 1):
        key, k1, k2 = jax.random.split(key, 3)
        fan_in = dims[i]
        w = jax.random.normal(k1, (dims[i], dims[i + 1]), jnp.float32) / math.sqrt(fan_in)
        b = 0.01 * jax.random.normal(k2, (dims[i + 1],), jnp.float32)
        mlp.append((w, b))
    params["mlp"] = mlp

    # Deconv stack: ConvTranspose2d layers (PyTorch weight layout (Ci, Co, k, k))
    deconv = []
    in_ch = deconv_input_channels
    for i, oc in enumerate(out_channels):
        key, k1, k2 = jax.random.split(key, 3)
        k_sz = kernels[i]
        fan_in = in_ch * k_sz * k_sz
        w = jax.random.normal(k1, (in_ch, oc, k_sz, k_sz), jnp.float32) / math.sqrt(fan_in)
        b = 0.01 * jax.random.normal(k2, (oc,), jnp.float32)
        deconv.append((w, b, strides[i], dec_paddings[i]))
        in_ch = oc
    params["deconv"] = deconv

    # GMM prior
    key, k1, k2 = jax.random.split(key, 3)
    prior_means = 0.31 * jax.random.normal(k1, (num_clusters, latent_dim), jnp.float32)
    prior_log_stds = jnp.log(5.0 * jax.random.uniform(k2, (num_clusters, latent_dim),
                                                      jnp.float32) + 1.0)
    params["prior_means"] = prior_means
    params["prior_log_stds"] = prior_log_stds
    params["prior_pi"] = jnp.ones((num_clusters,), jnp.float32) / num_clusters

    # GMM log p(z) coefficients, hoisted out of the forward path (param-only).
    inv_var = jnp.exp(-2.0 * prior_log_stds)                              # (K, D)
    params["gmm_zsq_coef"] = inv_var.T                                    # (D, K)
    params["gmm_mu_coef"] = (prior_means * inv_var).T                     # (D, K)
    params["gmm_const"] = (
        -0.5 * jnp.sum(prior_means ** 2 * inv_var, axis=-1)
        - jnp.sum(prior_log_stds, axis=-1)
        - 0.5 * latent_dim * math.log(2.0 * math.pi)
    ).reshape(1, num_clusters)                                            # (1, K)
    return params


# --------------------------------------------------------------------------
# Forward pass (Decoder_GMM.forward)
# --------------------------------------------------------------------------

def decoder_gmm_forward(params, z, x, rng):
    S, B, C, H, W = x.shape
    N = S * B

    # k ~ OneHotCategorical(prior_pi).argmax(-1): sampled but unused downstream.
    _k = jax.random.categorical(rng, jnp.log(params["prior_pi"]), shape=(N,))

    z2d = z.reshape(N, -1)

    # Fused MLP stack + GMM log p(z) (one pallas_call).
    h, log_pz_vec = mlp_gmm_pallas(z2d, params)
    log_pz = log_pz_vec.reshape(S, B)

    # Reshape boundary (channel-major as in torch), then NHWC for the deconvs.
    dc, dh, dw = params["deconv_input_shape"]
    h_nhwc = h.reshape(N, dc, dh, dw).transpose(0, 2, 3, 1)

    # Target converted to NHWC once (consumed by the fused last-layer LL).
    x_nhwc = x.reshape(N, C, H, W).transpose(0, 2, 3, 1)

    recon_nhwc, ll_vec = deconv_stack(params, h_nhwc, x_nhwc)

    recon = recon_nhwc.transpose(0, 3, 1, 2).reshape(S, B, C, H, W)
    ll = ll_vec.reshape(S, B)
    return recon, ll, log_pz


# --------------------------------------------------------------------------
# Main
# --------------------------------------------------------------------------

if __name__ == "__main__":
    S, B = 2, 4
    im_height = im_width = 16
    input_channels = 3
    channels = [8, 16]
    kernels = [4, 4]
    strides = [2, 2]
    paddings = [1, 1]
    dec_paddings = [1, 1]
    hidden_dims = [32]
    latent_dim = 8
    num_clusters = 5

    key = jax.random.PRNGKey(0)
    key, kp, kz, kx, kk = jax.random.split(key, 5)

    params = init_decoder_gmm_params(
        kp,
        im_height=im_height, im_width=im_width, input_channels=input_channels,
        channels=channels, kernels=kernels, strides=strides, paddings=paddings,
        hidden_dims=hidden_dims, latent_dim=latent_dim, dec_paddings=dec_paddings,
        num_clusters=num_clusters,
    )

    z = jax.random.normal(kz, (S, B, latent_dim), jnp.float32)
    x = jax.random.uniform(kx, (S, B, input_channels, im_height, im_width), jnp.float32)

    recon, ll, log_pz = decoder_gmm_forward(params, z, x, kk)
    recon = jax.block_until_ready(recon)
    ll = jax.block_until_ready(ll)
    log_pz = jax.block_until_ready(log_pz)

    assert recon.shape == (S, B, input_channels, im_height, im_width)
    assert ll.shape == (S, B)
    assert log_pz.shape == (S, B)
    assert bool(jnp.all(jnp.isfinite(recon)))
    assert bool(jnp.all(jnp.isfinite(ll)))
    assert bool(jnp.all(jnp.isfinite(log_pz)))
    assert bool(jnp.all((recon >= 0.0) & (recon <= 1.0)))  # sigmoid output

    print("KERNEL_OK")
</pallas_src>

<mosaic_0001>
module attributes {stable_mosaic.version = 11 : i64} {
  func.func @_mlp_gmm_kernel(%arg0: i32, %arg1: memref<16x8xf32, #tpu.memory_space<vmem>>, %arg2: memref<8x32xbf16, #tpu.memory_space<vmem>>, %arg3: memref<1x32xf32, #tpu.memory_space<vmem>>, %arg4: memref<32x256xbf16, #tpu.memory_space<vmem>>, %arg5: memref<1x256xf32, #tpu.memory_space<vmem>>, %arg6: memref<8x5xf32, #tpu.memory_space<vmem>>, %arg7: memref<8x5xf32, #tpu.memory_space<vmem>>, %arg8: memref<1x5xf32, #tpu.memory_space<vmem>>, %arg9: memref<16x256xf32, #tpu.memory_space<vmem>>, %arg10: memref<16x1xf32, #tpu.memory_space<vmem>>) attributes {dimension_semantics = [#tpu.dimension_semantics<parallel>], iteration_bounds = array<i64: 1>, scalar_prefetch = 0 : i64, scratch_operands = 0 : i64, tpu.core_type = #tpu.core_type<tc>, window_params = [{transform_indices = @transform_0, window_bounds = array<i64: 16, 8>}, {pipeline_mode = #tpu.pipeline_mode<synchronous>, transform_indices = @transform_1, window_bounds = array<i64: 8, 32>}, {pipeline_mode = #tpu.pipeline_mode<synchronous>, transform_indices = @transform_2, window_bounds = array<i64: 1, 32>}, {pipeline_mode = #tpu.pipeline_mode<synchronous>, transform_indices = @transform_3, window_bounds = array<i64: 32, 256>}, {pipeline_mode = #tpu.pipeline_mode<synchronous>, transform_indices = @transform_4, window_bounds = array<i64: 1, 256>}, {pipeline_mode = #tpu.pipeline_mode<synchronous>, transform_indices = @transform_5, window_bounds = array<i64: 8, 5>}, {pipeline_mode = #tpu.pipeline_mode<synchronous>, transform_indices = @transform_6, window_bounds = array<i64: 8, 5>}, {pipeline_mode = #tpu.pipeline_mode<synchronous>, transform_indices = @transform_7, window_bounds = array<i64: 1, 5>}, {transform_indices = @transform_8, window_bounds = array<i64: 16, 256>}, {transform_indices = @transform_9, window_bounds = array<i64: 16, 1>}]} {
    %c0 = arith.constant 0 : index
    %c0_0 = arith.constant 0 : index
    %0 = vector.load %arg1[%c0, %c0_0] : memref<16x8xf32, #tpu.memory_space<vmem>>, vector<16x8xf32>
    %1 = arith.truncf %0 : vector<16x8xf32> to vector<16x8xbf16>
    %c0_1 = arith.constant 0 : index
    %c0_2 = arith.constant 0 : index
    %2 = vector.load %arg2[%c0_1, %c0_2] : memref<8x32xbf16, #tpu.memory_space<vmem>>, vector<8x32xbf16>
    %cst = arith.constant dense<0.000000e+00> : vector<16x32xf32>
    %3 = tpu.matmul %1, %2, %cst {dimension_numbers = #tpu.dot_dimension_numbers<[1], [0], [0], [1], [0, 0, 1, 1], [], []>} : vector<16x8xbf16>, vector<8x32xbf16>, vector<16x32xf32> -> vector<16x32xf32>
    %c0_3 = arith.constant 0 : index
    %c0_4 = arith.constant 0 : index
    %4 = vector.load %arg3[%c0_3, %c0_4] : memref<1x32xf32, #tpu.memory_space<vmem>>, vector<1x32xf32>
    %5 = vector.broadcast %4 : vector<1x32xf32> to vector<16x32xf32>
    %6 = arith.addf %3, %5 : vector<16x32xf32>
    %cst_5 = arith.constant 0.000000e+00 : f32
    %7 = vector.broadcast %cst_5 : f32 to vector<16x32xf32>
    %8 = arith.maximumf %6, %7 : vector<16x32xf32>
    %9 = arith.truncf %8 : vector<16x32xf32> to vector<16x32xbf16>
    %c0_6 = arith.constant 0 : index
    %c0_7 = arith.constant 0 : index
    %10 = vector.load %arg4[%c0_6, %c0_7] : memref<32x256xbf16, #tpu.memory_space<vmem>>, vector<32x256xbf16>
    %cst_8 = arith.constant dense<0.000000e+00> : vector<16x256xf32>
    %11 = tpu.matmul %9, %10, %cst_8 {dimension_numbers = #tpu.dot_dimension_numbers<[1], [0], [0], [1], [0, 0, 1, 1], [], []>} : vector<16x32xbf16>, vector<32x256xbf16>, vector<16x256xf32> -> vector<16x256xf32>
    %c0_9 = arith.constant 0 : index
    %c0_10 = arith.constant 0 : index
    %12 = vector.load %arg5[%c0_9, %c0_10] : memref<1x256xf32, #tpu.memory_space<vmem>>, vector<1x256xf32>
    %13 = vector.broadcast %12 : vector<1x256xf32> to vector<16x256xf32>
    %14 = arith.addf %11, %13 : vector<16x256xf32>
    %cst_11 = arith.constant 0.000000e+00 : f32
    %15 = vector.broadcast %cst_11 : f32 to vector<16x256xf32>
    %16 = arith.maximumf %14, %15 : vector<16x256xf32>
    %c0_12 = arith.constant 0 : index
    %c0_13 = arith.constant 0 : index
    %17 = vector.load %arg9[%c0_12, %c0_13] : memref<16x256xf32, #tpu.memory_space<vmem>>, vector<16x256xf32>
    tpu.vector_store %arg9[%c0_12, %c0_13], %16 {strides = array<i32>} : memref<16x256xf32, #tpu.memory_space<vmem>>, vector<16x256xf32>,
    %18 = arith.mulf %0, %0 : vector<16x8xf32>
    %c0_14 = arith.constant 0 : index
    %c0_15 = arith.constant 0 : index
    %19 = vector.load %arg6[%c0_14, %c0_15] : memref<8x5xf32, #tpu.memory_space<vmem>>, vector<8x5xf32>
    %cst_16 = arith.constant dense<0.000000e+00> : vector<16x5xf32>
    %20 = tpu.matmul %18, %19, %cst_16 {dimension_numbers = #tpu.dot_dimension_numbers<[1], [0], [0], [1], [0, 0, 1, 1], [], []>} : vector<16x8xf32>, vector<8x5xf32>, vector<16x5xf32> -> vector<16x5xf32>
    %cst_17 = arith.constant -5.000000e-01 : f32
    %21 = vector.broadcast %cst_17 : f32 to vector<16x5xf32>
    %22 = arith.mulf %21, %20 : vector<16x5xf32>
    %c0_18 = arith.constant 0 : index
    %c0_19 = arith.constant 0 : index
    %23 = vector.load %arg7[%c0_18, %c0_19] : memref<8x5xf32, #tpu.memory_space<vmem>>, vector<8x5xf32>
    %cst_20 = arith.constant dense<0.000000e+00> : vector<16x5xf32>
    %24 = tpu.matmul %0, %23, %cst_20 {dimension_numbers = #tpu.dot_dimension_numbers<[1], [0], [0], [1], [0, 0, 1, 1], [], []>} : vector<16x8xf32>, vector<8x5xf32>, vector<16x5xf32> -> vector<16x5xf32>
    %25 = arith.addf %22, %24 : vector<16x5xf32>
    %c0_21 = arith.constant 0 : index
    %c0_22 = arith.constant 0 : index
    %26 = vector.load %arg8[%c0_21, %c0_22] : memref<1x5xf32, #tpu.memory_space<vmem>>, vector<1x5xf32>
    %27 = vector.broadcast %26 : vector<1x5xf32> to vector<16x5xf32>
    %28 = arith.addf %25, %27 : vector<16x5xf32>
    %cst_23 = arith.constant dense<0xFF800000> : vector<16xf32>
    %29 = vector.multi_reduction <maximumf>, %28, %cst_23 [1] : vector<16x5xf32> to vector<16xf32>
    %30 = vector.shape_cast %29 : vector<16xf32> to vector<16x1xf32>
    %31 = vector.broadcast %30 : vector<16x1xf32> to vector<16x5xf32>
    %32 = arith.subf %28, %31 : vector<16x5xf32>
    %33 = math.exp %32 : vector<16x5xf32>
    %cst_24 = arith.constant dense<0.000000e+00> : vector<16xf32>
    %34 = vector.multi_reduction <add>, %33, %cst_24 [1] : vector<16x5xf32> to vector<16xf32>
    %35 = vector.shape_cast %34 : vector<16xf32> to vector<16x1xf32>
    %36 = math.log %35 : vector<16x1xf32>
    %37 = arith.addf %30, %36 : vector<16x1xf32>
    %cst_25 = arith.constant 1.60943794 : f32
    %38 = vector.broadcast %cst_25 : f32 to vector<16x1xf32>
    %39 = arith.subf %37, %38 : vector<16x1xf32>
    %c0_26 = arith.constant 0 : index
    %c0_27 = arith.constant 0 : index
    %40 = vector.load %arg10[%c0_26, %c0_27] : memref<16x1xf32, #tpu.memory_space<vmem>>, vector<16x1xf32>
    tpu.vector_store %arg10[%c0_26, %c0_27], %39 {strides = array<i32>} : memref<16x1xf32, #tpu.memory_space<vmem>>, vector<16x1xf32>,
    return
  }
  func.func @transform_0(%arg0: i32) -> (i32, i32) {
    %c0_i32 = arith.constant 0 : i32
    %c0_i32_0 = arith.constant 0 : i32
    return %arg0, %c0_i32 : i32, i32
  }
  func.func @transform_1(%arg0: i32) -> (i32, i32) {
    %c0_i32 = arith.constant 0 : i32
    %c0_i32_0 = arith.constant 0 : i32
    %c0_i32_1 = arith.constant 0 : i32
    return %c0_i32, %c0_i32_0 : i32, i32
  }
  func.func @transform_2(%arg0: i32) -> (i32, i32) {
    %c0_i32 = arith.constant 0 : i32
    %c0_i32_0 = arith.constant 0 : i32
    %c0_i32_1 = arith.constant 0 : i32
    return %c0_i32, %c0_i32_0 : i32, i32
  }
  func.func @transform_3(%arg0: i32) -> (i32, i32) {
    %c0_i32 = arith.constant 0 : i32
    %c0_i32_0 = arith.constant 0 : i32
    %c0_i32_1 = arith.constant 0 : i32
    return %c0_i32, %c0_i32_0 : i32, i32
  }
  func.func @transform_4(%arg0: i32) -> (i32, i32) {
    %c0_i32 = arith.constant 0 : i32
    %c0_i32_0 = arith.constant 0 : i32
    %c0_i32_1 = arith.constant 0 : i32
    return %c0_i32, %c0_i32_0 : i32, i32
  }
  func.func @transform_5(%arg0: i32) -> (i32, i32) {
    %c0_i32 = arith.constant 0 : i32
    %c0_i32_0 = arith.constant 0 : i32
    %c0_i32_1 = arith.constant 0 : i32
    return %c0_i32, %c0_i32_0 : i32, i32
  }
  func.func @transform_6(%arg0: i32) -> (i32, i32) {
    %c0_i32 = arith.constant 0 : i32
    %c0_i32_0 = arith.constant 0 : i32
    %c0_i32_1 = arith.constant 0 : i32
    return %c0_i32, %c0_i32_0 : i32, i32
  }
  func.func @transform_7(%arg0: i32) -> (i32, i32) {
    %c0_i32 = arith.constant 0 : i32
    %c0_i32_0 = arith.constant 0 : i32
    %c0_i32_1 = arith.constant 0 : i32
    return %c0_i32, %c0_i32_0 : i32, i32
  }
  func.func @transform_8(%arg0: i32) -> (i32, i32) {
    %c0_i32 = arith.constant 0 : i32
    %c0_i32_0 = arith.constant 0 : i32
    return %arg0, %c0_i32 : i32, i32
  }
  func.func @transform_9(%arg0: i32) -> (i32, i32) {
    %c0_i32 = arith.constant 0 : i32
    %c0_i32_0 = arith.constant 0 : i32
    return %arg0, %c0_i32 : i32, i32
  }
}

</mosaic_0001>

<bundles_post_ra>
// kernel: tpu_custom_call.1
= control target key start
LH: loop header
LB: loop body
LE: loop exit
PB: predicated region body
PF: predicated region fallthrough
CT: control target
= control target key end

     0   :  { %15 = vsyncpa [#allocation3], 0  ;;  %s635_s0 = inlined_call_operand.vmem [shape: f32[16,8], index: 0, kind: input, shape index: {}]   ;;  %s636_s1 = inlined_call_operand.vmem [shape: bf16[8,32], index: 1, kind: input, shape index: {}]   ;;  %s637_s2 = inlined_call_operand.vmem [shape: f32[1,32], index: 2, kind: input, shape index: {}]   ;;  %s638_s3 = inlined_call_operand.hbm [shape: bf16[32,256], index: 3, kind: input, shape index: {}]   ;;  %s639_s4 = inlined_call_operand.vmem [shape: f32[1,256], index: 4, kind: input, shape index: {}]   ;;  %s640_s5 = inlined_call_operand.vmem [shape: f32[8,5], index: 5, kind: input, shape index: {}]   ;;  %s641_s6 = inlined_call_operand.vmem [shape: f32[8,5], index: 6, kind: input, shape index: {}]   ;;  %s642_s7 = inlined_call_operand.vmem [shape: f32[1,5], index: 7, kind: input, shape index: {}]   ;;  %s643_s8 = inlined_call_operand.hbm [shape: f32[16,256], index: 8, kind: output, shape index: {0}]   ;;  %s644_s9 = inlined_call_operand.vmem [shape: f32[16,1], index: 9, kind: output, shape index: {1}]  }
   0x1   :  { %16 = vsyncpa [#allocation4], 0  ;;  %s536_s30 = smov [#allocation2]  }
   0x2   :  { %s28_s10 = sshll.u32 %s536_s30, 4  ;;  %s29_s10 = int_to_ptr.vmem [resolvable:$true] %s28_s10 }
   0x3   :  { %s500_s11 = scalar_lea.vmem %s29_s10, 512  ;;  %p505_p1 = scmp.lt.s32.totalorder %s29_s10, %s29_s10 }
   0x4   :  { %p501_p0 = scmp.ne.s32.totalorder %s29_s10, %s500_s11  ;;  %p506_p2 = scmp.lt.s32.totalorder %s500_s11, %s500_s11 }
   0x6   :  { %p507_p3 = por %p506_p2, %p505_p1 }
   0x8   :  { %p508_p4 = pnand %p507_p3, %p501_p0 }
   0xa   :  { %511 = shalt.err (!%p508_p4)
}
   0xb   :  { %s537_s12 = smov 128   ;;  %s538_s13 = smov 8  }
   0xc   :  { %34 = dma.hbm_to_vmem [thread:$0]  %s638_s3, 512, %s29_s10, [#allocation3], %s537_s12, %s537_s12, %s538_s13  }
   0xd   :  { %532 = dma.done.wait [#allocation3], 512  }
   0xe   :  { %533 = vsyncadd [#allocation3], 4294966784  ;;  %v539_v0 = vmov 0.0   ;;  %vm540_vm0 = vmmov 0   ;;  %vm62_vm1 = vcmask 1043456   ;;  %v47_v2 = vld [vmem:[%s635_s0] sm:$0xff]  ;;  %v116_v48 = vlaneseq }
   0xf   :  { %453 = vmatprep.subr.bf16.mxu0 %v539_v0  ;;  %455 = vmatprep.mubr.msk.bf16.mxu0 %vm540_vm0, %v539_v0  ;;  %v50_v1 = vld [vmem:[%s636_s1] sm:$0xf]  ;;  %v48_v3 = vld [vmem:[%s635_s0 + $0x8] sm:$0xff]  ;;  %vm58_vm2 = vcmask 64512   ;;  %v201_v7 = vmul.f32 %v47_v2, %v47_v2  ;;  %v478_v10 = vld [vmem:[#allocation2 + $0x14] ss:$8 sps:$4 sm:$0xff]  }
  0x10   :  { %v64_v4 = vsel %vm62_vm1, %v50_v1, 0  ;;  %v49_v5 = vpack.c.bf16 %v48_v3, %v47_v2  ;;  %v203_v6 = vld [vmem:[%s640_s5] sm:$0xff]  ;;  %v202_v9 = vmul.f32 %v48_v3, %v48_v3  ;;  %v480_v11 = vld [vmem:[#allocation2 + $0x10] ss:$8 sps:$4 sm:$0xff]   ;;  %162 = vmatprep.subr.bf16.mxu1 %v478_v10  ;;  %v541_v14 = vmov 0   ;;  %s542_s25 = smov [#allocation5]  }
  0x11   :  { %454 = vmatpush3.bf16.msra.mxu0 %v64_v4  ;;  %v287_v8 = vld [vmem:[%s641_s6] sm:$0xff]  ;;  %163 = vmatpush1.bf16.msra.mxu1 %v480_v11  ;;  %vm146_vm3 = vcmask 261120   ;;  %vm380_vm4 = vcmask 39936   ;;  %v117_v49 = vshrl.u32 %v116_v48, 7  ;;  %s415_s26 = sshll.u32 %s542_s25, 4  ;;  %s416_s26 = int_to_ptr.vmem [resolvable:$true] %s415_s26 }
  0x12   :  { %459 = vmatprep.subr.mxu0 %v203_v6  ;;  %v481_v12 = vld [vmem:[#allocation2 + $0x4] ss:$8 sps:$4 sm:$0xff]   ;;  %v483_v13 = vld [vmem:[#allocation2] ss:$8 sps:$4 sm:$0xff]   ;;  %182 = vmatprep.mubr.bf16.mxu1 %v541_v14  ;;  %p517_p6 = scmp.lt.s32.totalorder %s416_s26, %s416_s26 }
  0x13   :  { %164 = vmatprep.subr.bf16.mxu1 %v481_v12  ;;  %v431_v15 = vld [vmem:[%s637_s2] ss:$0 sm:$0xff]  ;;  %v118_v50 = vsub.s32 0, %v117_v49  ;;  %v122_v52 = vsub.s32 1, %v117_v49 }
  0x14   :  { %456 = vmatmul.mubr.msk.bf16.vlgmr.msra.gmra.mxu0 %vm58_vm2, %v49_v5  ;;  %v442_v33 = vld [vmem:[%s642_s7] ss:$0 sm:$0xff] }
  0x15   :  { %460 = vmatpush3.msra.mxu0 %v203_v6  ;;  %461 = vmatprep.mubr.msk.f32.mxu0 %vm58_vm2, %v201_v7  ;;  %v114_v51 = vld [vmem:[%s639_s4] sm:$0x3]  ;;  %s512_s4 = scalar_lea.vmem %s416_s26, 512 }
  0x16   :  { %464 = vmatprep.subr.mxu0 %v287_v8  ;;  %165 = vmatpush1.bf16.msra.mxu1 %v483_v13  ;;  %v119_v53 = vrot.slane %v114_v51, %v118_v50  ;;  %v123_v54 = vrot.slane %v114_v51, %v122_v52  ;;  %p513_p5 = scmp.ne.s32.totalorder %s416_s26, %s512_s4  ;;  %p518_p7 = scmp.lt.s32.totalorder %s512_s4, %s512_s4 }
  0x18   :  { %p519_p8 = por %p518_p7, %p517_p6 }
  0x1a   :  { %p520_p9 = pnand %p519_p8, %p513_p5 }
  0x1c   :  { %462 = vmatmul.mubr.msk.f32.vlgmr.msra.gmra.mxu0 %vm58_vm2, %v202_v9 }
  0x1d   :  { %465 = vmatpush3.msra.mxu0 %v287_v8  ;;  %466 = vmatprep.mubr.msk.f32.mxu0 %vm58_vm2, %v47_v2 }
  0x20   :  { %467 = vmatmul.mubr.msk.f32.vlgmr.msra.gmra.mxu0 %vm58_vm2, %v48_v3 }
  0xd4   :  { %v100_v16 = vpop.f32.mrf.mxu0 }
  0xd5   :  { %v101_v18 = vadd.f32 %v431_v15, %v100_v16 }
  0xd6   :  { %v457_v17 = vpop.f32.mrf.mxu0 }
  0xd7   :  { %v107_v22 = vmax.f32 %v101_v18, 0.0 }
  0xd8   :  { %v103_v19 = vpop.f32.mrf.mxu0 }
  0xd9   :  { %v104_v20 = vadd.f32 %v431_v15, %v103_v19 }
  0xda   :  { %v458_v21 = vpop.f32.mrf.mxu0 }
  0xdb   :  { %v108_v23 = vmax.f32 %v104_v20, 0.0 }
  0xdc   :  { %v463_v24 = vpop.f32.mrf.mxu0 }
  0xdd   :  { %v109_v25 = vpack.c.bf16 %v108_v23, %v107_v22  ;;  %v286_v28 = vmul.f32 -0.5, %v463_v24 }
  0xde   :  { %v276_v26 = vpop.f32.mrf.mxu0 }
  0xdf   :  { %437 = vmatmul.mubr.msk.bf16.vlgmr.msra.gmra.mxu1 %vm146_vm3, %v109_v25  ;;  %v285_v29 = vmul.f32 -0.5, %v276_v26 }
  0xe0   :  { %v468_v27 = vpop.f32.mrf.mxu0 }
  0xe1   :  { %v370_v31 = vadd.f32 %v468_v27, %v286_v28 }
  0xe2   :  { %v360_v30 = vpop.f32.mrf.mxu0 }
  0xe3   :  { %v369_v32 = vadd.f32 %v360_v30, %v285_v29  ;;  %v379_v36 = vadd.f32 %v442_v33, %v370_v31 }
  0xe5   :  { %v378_v34 = vadd.f32 %v442_v33, %v369_v32  ;;  %v384_v37 = vsel %vm380_vm4, %v379_v36, -inf }
  0xe7   :  { %v381_v35 = vsel %vm380_vm4, %v378_v34, -inf }
  0xe8   :  { %382 = vmax.xlane.f32.xlu0 %v381_v35 }
  0xec   :  { %385 = vmax.xlane.f32.xlu0 %v384_v37 }
 0x171   :  { %v383_v38 = vpop.xlane.xlu0 %382 }
 0x172   :  { %v387_v39 = vsub.f32 %v378_v34, %v383_v38 }
 0x174   :  { %v389_v40 = vmul.f32 1.442695, %v387_v39 }
 0x175   :  { %v386_v41 = vpop.xlane.xlu0 %385 }
 0x176   :  { %484 = vpow2.f32 %v389_v40  ;;  %v388_v42 = vsub.f32 %v379_v36, %v386_v41 }
 0x178   :  { %v391_v43 = vmul.f32 1.442695, %v388_v42 }
 0x17a   :  { %486 = vpow2.f32 %v391_v43 }
 0x183   :  { %v485_v44 = vpop.eup %484 }
 0x184   :  { %v393_v45 = vsel %vm380_vm4, %v485_v44, 0.0 }
 0x185   :  { %394 = vadd.xlane.f32.xlu1 %v393_v45 }
 0x187   :  { %v487_v46 = vpop.eup %486 }
 0x188   :  { %v396_v47 = vsel %vm380_vm4, %v487_v46, 0.0 }
 0x189   :  { %397 = vadd.xlane.f32.xlu1 %v396_v47 }
 0x19f   :  { %v184_v55 = vpop.f32.mrf.mxu1 }
 0x1a0   :  { %v185_v56 = vadd.f32 %v184_v55, %v119_v53 }
 0x1a1   :  { %v186_v57 = vpop.f32.mrf.mxu1 }
 0x1a2   :  { %v193_v58 = vmax.f32 %v185_v56, 0.0  ;;  %v187_v59 = vadd.f32 %v186_v57, %v123_v54 }
 0x1a3   :  { %v188_v60 = vpop.f32.mrf.mxu1 }
 0x1a4   :  { %197 = vst [vmem:[#allocation5] sm:$0xff] %v193_v58  ;;  %v194_v61 = vmax.f32 %v187_v59, 0.0  ;;  %v189_v62 = vadd.f32 %v188_v60, %v119_v53 }
 0x1a5   :  { %v190_v63 = vpop.f32.mrf.mxu1 }
 0x1a6   :  { %198 = vst [vmem:[#allocation5 + $0x8] sm:$0xff] %v194_v61  ;;  %v195_v0 = vmax.f32 %v189_v62, 0.0  ;;  %v191_v1 = vadd.f32 %v190_v63, %v123_v54 }
 0x1a8   :  { %199 = vst [vmem:[#allocation5 + $0x10] sm:$0xff] %v195_v0  ;;  %v196_v2 = vmax.f32 %v191_v1, 0.0 }
 0x1aa   :  { %200 = vst [vmem:[#allocation5 + $0x18] sm:$0xff] %v196_v2 }
 0x1ab   :  { %523 = shalt.err (!%p520_p9)
}
 0x1ac   :  { %s543_s27 = smov 256   ;;  %s544_s28 = smov 16   ;;  %vm407_vm5 = vcmask 7168  }
 0x1ad   :  { %421 = dma.vmem_to_hbm [thread:$0]  %s416_s26, 512, %s643_s8, [#allocation4], %s543_s27, %s543_s27, %s544_s28  }
 0x20e   :  { %v395_v3 = vpop.xlane.xlu1 %394 }
 0x20f   :  { %488 = vlog2.f32 %v395_v3 }
 0x212   :  { %v398_v4 = vpop.xlane.xlu1 %397 }
 0x213   :  { %490 = vlog2.f32 %v398_v4 }
 0x21c   :  { %v489_v5 = vpop.eup %488 }
 0x21d   :  { %v400_v6 = vmul.f32 0.6931472, %v489_v5 }
 0x21f   :  { %v403_v7 = vadd.f32 %v400_v6, %v383_v38 }
 0x220   :  { %v491_v8 = vpop.eup %490 }
 0x221   :  { %v443_v9 = vadd.f32 -1.609438, %v403_v7  ;;  %v402_v10 = vmul.f32 0.6931472, %v491_v8 }
 0x223   :  { %408 = vst.msk [vmem:[%s644_s9] sm:$0xff] %vm407_vm5, %v443_v9  ;;  %v404_v11 = vadd.f32 %v402_v10, %v386_v41 }
 0x225   :  { %v444_v12 = vadd.f32 -1.609438, %v404_v11 }
 0x227   :  { %409 = vst.msk [vmem:[%s644_s9 + $0x8] sm:$0xff] %vm407_vm5, %v444_v12 }
 0x228   :  { %534 = dma.done.wait [#allocation4], 512  }
 0x229   :  { %535 = vsyncadd [#allocation4], 4294966784 }
 0x22a   :  { %429 = vsyncpa [#allocation3], 1 }
 0x22b   :  { %430 = vsyncpa [#allocation4], 1 }

</bundles_post_ra>
